<compile_context>
chip_gen: v6e
topology: v6e:2x2x1
jax: 0.10.0
libtpu: 0.0.40
codegen_flags: <defaults>
</compile_context>

<pallas_src>
import functools

import jax
import jax.numpy as jnp
from jax.experimental import pallas as pl
from jax.experimental.pallas import tpu as pltpu


def _sublane_multiple(dtype) -> int:
    itemsize = jnp.dtype(dtype).itemsize
    if itemsize >= 4:
        return 8
    if itemsize == 2:
        return 16
    return 32


def _tile_bytes_for_device() -> int:
    """Target bytes per VMEM buffer tile, by TPU generation."""
    try:
        kind = jax.devices()[0].device_kind.lower()
    except Exception:  # pragma: no cover - be robust to odd backends
        kind = ""
    if "v7" in kind:
        return 8 * 1024 * 1024  # 3.2 TB/s HBM: amortize per-step overhead
    if "v6" in kind:
        return 4 * 1024 * 1024  # fits 32 MiB scoped default comfortably
    return 2 * 1024 * 1024      # v5e / unknown: safe under 16 MiB default


def plus_const_kernel(x_ref, o_ref, *, const):
    # Elementwise hot path: whole VMEM tile + immediate constant (VPU add).
    o_ref[...] = x_ref[...] + jnp.asarray(const, dtype=o_ref.dtype)


def plus_constant(x, const=1, *, force_pallas=False):
    """f(x) = x + const. Any input shape; Pallas path for aligned sizes."""
    orig_shape = x.shape

    # PyTorch-style promotion: int tensor + 0.5 -> float, float + int -> float.
    out_dtype = jnp.result_type(x.dtype, const)
    if out_dtype != x.dtype:
        x = x.astype(out_dtype)
    itemsize = jnp.dtype(out_dtype).itemsize

    total = 1
    for d in orig_shape:
        total *= d

    # Tiny inputs: custom-call launch/reshape overhead dwarfs the add;
    # a single fused XLA elementwise op is strictly faster.
    if total == 0 or (not force_pallas and total * itemsize < 256 * 1024):
        return x + jnp.asarray(const, dtype=out_dtype)

    # Misaligned totals: pad+slice around a pallas_call would add two extra
    # full HBM passes (custom calls don't fuse into pad/slice); a plain XLA
    # add is already at the 2-pass roofline, so use it instead.
    # TODO(synk): optional ragged-last-block Pallas path if a custom call is
    # ever required for misaligned sizes.
    if total % 128 != 0:
        return x + jnp.asarray(const, dtype=out_dtype)

    # Lane-dense 2-D slab: largest lane width (<=1024) dividing the count.
    lane = 128
    for cand in (1024, 512, 256, 128):
        if total % cand == 0:
            lane = cand
            break
    rows = total // lane
    x2d = x.reshape(rows, lane)  # contiguous flatten -> free, no pad

    sub = _sublane_multiple(out_dtype)
    tile_bytes = _tile_bytes_for_device()

    # Rows per tile: multiple of the dtype sublane packing, ~tile_bytes each.
    tile_rows = max(sub, (tile_bytes // (lane * itemsize)) // sub * sub)

    if tile_rows >= rows:
        if rows >= 2 * sub:
            # Keep >=2 grid blocks so multi-TensorCore chips (v7x) shard the
            # "parallel" axis instead of leaving a core idle.
            tile_rows = pl.cdiv(pl.cdiv(rows, 2), sub) * sub
        else:
            tile_rows = rows  # single block equal to full dim (always legal)

    grid = (pl.cdiv(rows, tile_rows),)

    # Explicit VMEM budget: in+out double-buffered = 4 tiles, plus headroom.
    tile_footprint = tile_rows * lane * itemsize
    vmem_limit = min(max(32 << 20, 4 * tile_footprint + (8 << 20)), 48 << 20)

    kernel = functools.partial(plus_const_kernel, const=const)

    out2d = pl.pallas_call(
        kernel,
        out_shape=jax.ShapeDtypeStruct((rows, lane), out_dtype),
        grid=grid,
        in_specs=[pl.BlockSpec((tile_rows, lane), lambda i: (i, 0))],
        out_specs=pl.BlockSpec((tile_rows, lane), lambda i: (i, 0)),
        compiler_params=pltpu.CompilerParams(
            dimension_semantics=("parallel",),
            vmem_limit_bytes=vmem_limit,
        ),
        cost_estimate=pl.CostEstimate(
            flops=total,
            transcendentals=0,
            bytes_accessed=2 * total * itemsize,
        ),
    )(x2d)

    return out2d.reshape(orig_shape)


if __name__ == "__main__":
    key = jax.random.PRNGKey(0)
    # NCHW input consistent with the vision module: batch=2, channels=4, 16x16.
    x = jax.random.normal(key, (2, 4, 16, 16), dtype=jnp.float32)

    const = 1  # default const from PlusConstant.__init__
    # force_pallas=True exercises the kernel path even at this small demo size
    # (the production wrapper would take the fused-XLA early-out here).
    out = plus_constant(x, const=const, force_pallas=True)
    out = jax.block_until_ready(out)

    # Correctness check against plain JAX reference.
    ref = x + const
    assert out.shape == x.shape and out.dtype == x.dtype
    assert jnp.allclose(out, ref, atol=1e-6, rtol=1e-6)

    print("KERNEL_OK")
</pallas_src>

<mosaic_0001>
module attributes {stable_mosaic.version = 11 : i64} {
  func.func @plus_const_kernel(%arg0: i32, %arg1: memref<2x1024xf32, #tpu.memory_space<vmem>>, %arg2: memref<2x1024xf32, #tpu.memory_space<vmem>>) attributes {dimension_semantics = [#tpu.dimension_semantics<parallel>], iteration_bounds = array<i64: 1>, scalar_prefetch = 0 : i64, scratch_operands = 0 : i64, tpu.core_type = #tpu.core_type<tc>, window_params = [{transform_indices = @transform_0, window_bounds = array<i64: 2, 1024>}, {transform_indices = @transform_1, window_bounds = array<i64: 2, 1024>}]} {
    %c0 = arith.constant 0 : index
    %c0_0 = arith.constant 0 : index
    %0 = vector.load %arg1[%c0, %c0_0] : memref<2x1024xf32, #tpu.memory_space<vmem>>, vector<2x1024xf32>
    %cst = arith.constant 1.000000e+00 : f32
    %1 = vector.broadcast %cst : f32 to vector<2x1024xf32>
    %2 = arith.addf %0, %1 : vector<2x1024xf32>
    %c0_1 = arith.constant 0 : index
    %c0_2 = arith.constant 0 : index
    %3 = vector.load %arg2[%c0_1, %c0_2] : memref<2x1024xf32, #tpu.memory_space<vmem>>, vector<2x1024xf32>
    tpu.vector_store %arg2[%c0_1, %c0_2], %2 {strides = array<i32>} : memref<2x1024xf32, #tpu.memory_space<vmem>>, vector<2x1024xf32>,
    return
  }
  func.func @transform_0(%arg0: i32) -> (i32, i32) {
    %c0_i32 = arith.constant 0 : i32
    %c0_i32_0 = arith.constant 0 : i32
    return %arg0, %c0_i32 : i32, i32
  }
  func.func @transform_1(%arg0: i32) -> (i32, i32) {
    %c0_i32 = arith.constant 0 : i32
    %c0_i32_0 = arith.constant 0 : i32
    return %arg0, %c0_i32 : i32, i32
  }
}

</mosaic_0001>

<bundles_post_ra>
// kernel: tpu_custom_call.1
= control target key start
LH: loop header
LB: loop body
LE: loop exit
PB: predicated region body
PF: predicated region fallthrough
CT: control target
= control target key end

     0   :  { %6 = vsyncpa [#allocation3], 0  ;;  %s106_s0 = inlined_call_operand.hbm [shape: f32[2,1024], index: 0, kind: input, shape index: {}]   ;;  %s107_s1 = inlined_call_operand.hbm [shape: f32[2,1024], index: 1, kind: output, shape index: {}]  }
   0x1   :  { %7 = vsyncpa [#allocation4], 0  ;;  %s88_s6 = smov [#allocation2]  }
   0x2   :  { %s14_s7 = sshll.u32 %s88_s6, 4  ;;  %s15_s7 = int_to_ptr.vmem [resolvable:$true] %s14_s7 }
   0x3   :  { %s52_s8 = scalar_lea.vmem %s15_s7, 256  ;;  %p57_p1 = scmp.lt.s32.totalorder %s15_s7, %s15_s7 }
   0x4   :  { %p53_p0 = scmp.ne.s32.totalorder %s15_s7, %s52_s8  ;;  %p58_p2 = scmp.lt.s32.totalorder %s52_s8, %s52_s8 }
   0x6   :  { %p59_p3 = por %p58_p2, %p57_p1 }
   0x8   :  { %p60_p4 = pnand %p59_p3, %p53_p0 }
   0xa   :  { %63 = shalt.err (!%p60_p4)
}
   0xb   :  { %17 = dma.hbm_to_vmem [thread:$0]  %s106_s0, 256, %s15_s7, [#allocation3]  }
   0xc   :  { %84 = dma.done.wait [#allocation3], 256  }
   0xd   :  { %85 = vsyncadd [#allocation3], 4294967040  ;;  %s89_s11 = smov [#allocation5]   ;;  %v21_v0 = vld [vmem:[#allocation2] sm:$0xff]  ;;  %v22_v1 = vld [vmem:[#allocation2 + $0x8] sm:$0xff] }
   0xe   :  { %s33_s12 = sshll.u32 %s89_s11, 4  ;;  %v23_v2 = vadd.f32 1.0, %v21_v0  ;;  %v24_v3 = vadd.f32 1.0, %v22_v1  ;;  %s34_s12 = int_to_ptr.vmem [resolvable:$true] %s33_s12 }
   0xf   :  { %s64_s13 = scalar_lea.vmem %s34_s12, 256  ;;  %p69_p6 = scmp.lt.s32.totalorder %s34_s12, %s34_s12 }
  0x10   :  { %25 = vst [vmem:[#allocation5] sm:$0xff] %v23_v2  ;;  %26 = vst [vmem:[#allocation5 + $0x8] sm:$0xff] %v24_v3  ;;  %p65_p5 = scmp.ne.s32.totalorder %s34_s12, %s64_s13  ;;  %p70_p7 = scmp.lt.s32.totalorder %s64_s13, %s64_s13 }
  0x12   :  { %p71_p8 = por %p70_p7, %p69_p6 }
  0x14   :  { %p72_p9 = pnand %p71_p8, %p65_p5 }
  0x16   :  { %75 = shalt.err (!%p72_p9)
}
  0x17   :  { %36 = dma.vmem_to_hbm [thread:$0]  %s34_s12, 256, %s107_s1, [#allocation4]  }
  0x18   :  { %86 = dma.done.wait [#allocation4], 256  }
  0x19   :  { %87 = vsyncadd [#allocation4], 4294967040 }
  0x1a   :  { %40 = vsyncpa [#allocation3], 1 }
  0x1b   :  { %41 = vsyncpa [#allocation4], 1 }

</bundles_post_ra>
